<compile_context>
chip_gen: v5e
topology: v5e:2x2
jax: 0.10.0
libtpu: 0.0.40
codegen_flags: <defaults>
</compile_context>

<pallas_src>
import math

import jax
import jax.numpy as jnp
from jax import lax
from jax.experimental import pallas as pl
from jax.experimental.pallas import tpu as pltpu

LANE = 128
SUB = 8
BN_EPS = 1e-5
VMEM_LIMIT = 32 * 1024 * 1024  # <= physical on v7x (64 MiB), >= default on v5e


def _round_up(x, m):
    return ((x + m - 1) // m) * m


# ---------------------------------------------------------------------------
# Kernel 1: conv-as-matmul (bf16 MXU, f32 accumulate, K-tiled) with the
#           BatchNorm statistics reduction fused into the epilogue.
# ---------------------------------------------------------------------------
def _matmul_bn_stats_kernel(a_ref, b_ref, o_ref, sum_ref, sq_ref, acc_ref):
    k = pl.program_id(2)

    @pl.when(k == 0)
    def _():
        acc_ref[...] = jnp.zeros_like(acc_ref)

    acc_ref[...] += jnp.dot(a_ref[...], b_ref[...],
                            preferred_element_type=jnp.float32)

    @pl.when(k == pl.num_programs(2) - 1)
    def _():
        y = acc_ref[...]
        o_ref[...] = y
        s = jnp.sum(y, axis=0, keepdims=True)        # (1, TN)
        sq = jnp.sum(y * y, axis=0, keepdims=True)   # (1, TN)
        # stats outputs are (1, 8, TN) blocks (8-sublane aligned); replicate.
        sum_ref[...] = jnp.broadcast_to(s[None], sum_ref.shape)
        sq_ref[...] = jnp.broadcast_to(sq[None], sq_ref.shape)


def matmul_bn_stats(a_bf16, b_bf16, tm, tn, tk):
    """(Mp,Kp)bf16 @ (Kp,Np)bf16 -> (Mp,Np)f32 plus per-channel sum / sumsq."""
    Mp, Kp = a_bf16.shape
    Kp2, Np = b_bf16.shape
    assert Kp == Kp2 and Mp % tm == 0 and Np % tn == 0 and Kp % tk == 0
    nm, nn, nk = Mp // tm, Np // tn, Kp // tk

    cost = pl.CostEstimate(
        flops=2 * Mp * Np * Kp,
        transcendentals=0,
        bytes_accessed=2 * (Mp * Kp + Kp * Np) + 4 * Mp * Np
        + 2 * 4 * nm * SUB * Np)

    y, psum, psq = pl.pallas_call(
        _matmul_bn_stats_kernel,
        out_shape=(jax.ShapeDtypeStruct((Mp, Np), jnp.float32),
                   jax.ShapeDtypeStruct((nm, SUB, Np), jnp.float32),
                   jax.ShapeDtypeStruct((nm, SUB, Np), jnp.float32)),
        grid=(nm, nn, nk),
        in_specs=[pl.BlockSpec((tm, tk), lambda i, j, k: (i, k)),
                  pl.BlockSpec((tk, tn), lambda i, j, k: (k, j))],
        out_specs=(pl.BlockSpec((tm, tn), lambda i, j, k: (i, j)),
                   pl.BlockSpec((1, SUB, tn), lambda i, j, k: (i, 0, j)),
                   pl.BlockSpec((1, SUB, tn), lambda i, j, k: (i, 0, j))),
        scratch_shapes=[pltpu.VMEM((tm, tn), jnp.float32)],
        compiler_params=pltpu.CompilerParams(
            dimension_semantics=("parallel", "parallel", "arbitrary"),
            vmem_limit_bytes=VMEM_LIMIT),
        cost_estimate=cost,
    )(a_bf16, b_bf16)

    # tiny (nm, C) reduction of the per-M-block partial stats
    s = jnp.sum(psum[:, 0, :], axis=0)
    sq = jnp.sum(psq[:, 0, :], axis=0)
    return y, s, sq


# ---------------------------------------------------------------------------
# Kernel 2: fused BatchNorm normalize/affine + ReLU (per-channel scale/shift)
# ---------------------------------------------------------------------------
def _bn_affine_relu_kernel(x_ref, s_ref, b_ref, o_ref):
    o_ref[...] = jnp.maximum(x_ref[...] * s_ref[...] + b_ref[...], 0.0)


def bn_affine_relu(y, scale, shift, tm):
    Mp, Cp = y.shape
    assert Mp % tm == 0
    return pl.pallas_call(
        _bn_affine_relu_kernel,
        out_shape=jax.ShapeDtypeStruct((Mp, Cp), jnp.float32),
        grid=(Mp // tm,),
        in_specs=[pl.BlockSpec((tm, Cp), lambda i: (i, 0)),
                  pl.BlockSpec((1, Cp), lambda i: (0, 0)),
                  pl.BlockSpec((1, Cp), lambda i: (0, 0))],
        out_specs=pl.BlockSpec((tm, Cp), lambda i: (i, 0)),
        compiler_params=pltpu.CompilerParams(
            dimension_semantics=("parallel",),
            vmem_limit_bytes=VMEM_LIMIT),
    )(y, scale.reshape(1, Cp).astype(jnp.float32),
      shift.reshape(1, Cp).astype(jnp.float32))


# ---------------------------------------------------------------------------
# Tiling helpers
# ---------------------------------------------------------------------------
def _matmul_tiles(M, K, N):
    # 256-wide lane tiles feed v6e/v7x's 256x256 MXU when the padded N allows
    # it; 128 already saturates v5e's 128x128 MXU (and is all a small Cout
    # padding permits).  M tile 256 gives >=2 "parallel" blocks for megacore.
    Np = _round_up(N, LANE)
    tn = 256 if Np % 256 == 0 else LANE
    if K > 512:
        Kp = _round_up(K, 512)
        tk = 512
    else:
        Kp = _round_up(K, LANE)
        tk = Kp
    tm = 256
    Mp = _round_up(max(M, tm), tm)
    return Mp, Kp, Np, tm, tn, tk


def _affine_tile(Mp):
    if Mp >= 1024 and Mp % 512 == 0:
        return 512
    if Mp >= 512 and Mp % 256 == 0:
        return 256
    return min(Mp, 256)


# ---------------------------------------------------------------------------
# BaseStem forward
# ---------------------------------------------------------------------------
def base_stem_forward(params, x_nchw):
    """Conv7x7/s2/p3 (no bias) -> BatchNorm2d (batch stats) -> ReLU
       -> max_pool2d 3x3/s2/p1.  NCHW in, NCHW out."""
    w = params['w']                                   # (Cout, Cin, 7, 7) f32
    gamma, beta = params['gamma'], params['beta']
    Cout, Cin, kh, kw = w.shape
    N, Cin_x, H, W = x_nchw.shape
    assert Cin_x == Cin
    stride, pad = 2, 3
    oh = (H + 2 * pad - kh) // stride + 1
    ow = (W + 2 * pad - kw) // stride + 1
    M = N * oh * ow
    K = kh * kw * Cin
    Mp, Kp, Np, tm, tn, tk = _matmul_tiles(M, K, Cout)

    # im2col built directly in bf16 (NHWC, channels on the lane axis): halves
    # the HBM traffic of the kh*kw-amplified patch tensor and feeds the MXU
    # its native dtype.  Accumulation stays f32 inside the kernel.
    x_nhwc = jnp.transpose(x_nchw, (0, 2, 3, 1)).astype(jnp.bfloat16)
    x_pad = jnp.pad(x_nhwc, ((0, 0), (pad, pad), (pad, pad), (0, 0)))
    taps = []
    for dy in range(kh):
        for dx in range(kw):
            taps.append(lax.slice(
                x_pad, (0, dy, dx, 0),
                (N, dy + (oh - 1) * stride + 1,
                 dx + (ow - 1) * stride + 1, Cin),
                (1, stride, stride, 1)))
    patches = jnp.stack(taps, axis=3)                 # (N, oh, ow, kh*kw, Cin)
    a = patches.reshape(M, K)
    a = jnp.pad(a, ((0, Mp - M), (0, Kp - K)))        # padded once, kept padded

    # Weights reshaped/padded once: (Cout, Cin, kh, kw) -> (kh*kw*Cin, Cout)
    b = jnp.transpose(w, (2, 3, 1, 0)).reshape(K, Cout).astype(jnp.bfloat16)
    b = jnp.pad(b, ((0, Kp - K), (0, Np - Cout)))

    # Fused conv matmul + BN statistics (single pass over the conv output).
    y, s, sq = matmul_bn_stats(a, b, tm, tn, tk)

    # BatchNorm (training mode, biased batch variance) folded to scale/shift.
    count = float(M)
    mean = s / count
    var = jnp.maximum(sq / count - mean * mean, 0.0)  # clamp f32 cancellation
    gamma_p = jnp.pad(gamma, (0, Np - Cout), constant_values=1.0)
    beta_p = jnp.pad(beta, (0, Np - Cout))
    scale = gamma_p * lax.rsqrt(var + BN_EPS)
    shift = beta_p - mean * scale

    # Fused normalize + affine + ReLU on the channel-padded layout.
    yr = bn_affine_relu(y, scale, shift, _affine_tile(Mp))

    # max_pool2d 3x3/s2/p1 on NHWC; channels stay padded until the final slice.
    feat = yr[:M].reshape(N, oh, ow, Np)
    # TODO(synk): overlapping 3x3/s2 pooling windows do not map to a
    # rectangular BlockSpec tiling, so the max-pool stays on lax.reduce_window.
    pooled = lax.reduce_window(
        feat, jnp.array(-jnp.inf, feat.dtype), lax.max,
        (1, 3, 3, 1), (1, 2, 2, 1),
        ((0, 0), (1, 1), (1, 1), (0, 0)))
    pooled = pooled[..., :Cout]
    return jnp.transpose(pooled, (0, 3, 1, 2))        # NHWC -> NCHW


# ---------------------------------------------------------------------------
# Parameter init (matches nn.init.kaiming_uniform_(w, a=1), fresh BatchNorm2d)
# ---------------------------------------------------------------------------
def init_base_stem(key, cin, cout, k=7, a=1.0):
    fan_in = cin * k * k
    gain = math.sqrt(2.0 / (1.0 + a * a))
    bound = gain * math.sqrt(3.0 / fan_in)
    w = jax.random.uniform(key, (cout, cin, k, k), jnp.float32, -bound, bound)
    return {'w': w,
            'gamma': jnp.ones((cout,), jnp.float32),
            'beta': jnp.zeros((cout,), jnp.float32)}


# ---------------------------------------------------------------------------
if __name__ == "__main__":
    class _Model:                      # stand-in for cfg.model
        stem_out_channels = 8

    class _Cfg:
        model = _Model()

    cfg = _Cfg()

    key = jax.random.PRNGKey(0)
    kx, kw = jax.random.split(key)
    x = jax.random.normal(kx, (2, 3, 32, 32), jnp.float32)
    params = init_base_stem(kw, 3, cfg.model.stem_out_channels)

    fwd = jax.jit(base_stem_forward)
    out = fwd(params, x)
    out = jax.block_until_ready(out)

    # conv s2: 32 -> 16, maxpool s2: 16 -> 8
    assert out.shape == (2, cfg.model.stem_out_channels, 8, 8), out.shape
    assert bool(jnp.all(jnp.isfinite(out)))
    assert bool(jnp.all(out >= 0.0))
    print("KERNEL_OK")
</pallas_src>

<mosaic_0001>
module attributes {stable_mosaic.version = 11 : i64} {
  func.func @_bn_affine_relu_kernel(%arg0: i32, %arg1: memref<256x128xf32, #tpu.memory_space<vmem>>, %arg2: memref<1x128xf32, #tpu.memory_space<vmem>>, %arg3: memref<1x128xf32, #tpu.memory_space<vmem>>, %arg4: memref<256x128xf32, #tpu.memory_space<vmem>>) attributes {dimension_semantics = [#tpu.dimension_semantics<parallel>], iteration_bounds = array<i64: 2>, scalar_prefetch = 0 : i64, scratch_operands = 0 : i64, tpu.core_type = #tpu.core_type<tc>, window_params = [{transform_indices = @transform_0, window_bounds = array<i64: 256, 128>}, {pipeline_mode = #tpu.pipeline_mode<synchronous>, transform_indices = @transform_1, window_bounds = array<i64: 1, 128>}, {pipeline_mode = #tpu.pipeline_mode<synchronous>, transform_indices = @transform_2, window_bounds = array<i64: 1, 128>}, {transform_indices = @transform_3, window_bounds = array<i64: 256, 128>}]} {
    %c0 = arith.constant 0 : index
    %c0_0 = arith.constant 0 : index
    %0 = vector.load %arg1[%c0, %c0_0] : memref<256x128xf32, #tpu.memory_space<vmem>>, vector<256x128xf32>
    %c0_1 = arith.constant 0 : index
    %c0_2 = arith.constant 0 : index
    %1 = vector.load %arg2[%c0_1, %c0_2] : memref<1x128xf32, #tpu.memory_space<vmem>>, vector<1x128xf32>
    %2 = vector.broadcast %1 : vector<1x128xf32> to vector<256x128xf32>
    %3 = arith.mulf %0, %2 : vector<256x128xf32>
    %c0_3 = arith.constant 0 : index
    %c0_4 = arith.constant 0 : index
    %4 = vector.load %arg3[%c0_3, %c0_4] : memref<1x128xf32, #tpu.memory_space<vmem>>, vector<1x128xf32>
    %5 = vector.broadcast %4 : vector<1x128xf32> to vector<256x128xf32>
    %6 = arith.addf %3, %5 : vector<256x128xf32>
    %cst = arith.constant 0.000000e+00 : f32
    %7 = vector.broadcast %cst : f32 to vector<256x128xf32>
    %8 = arith.maximumf %6, %7 : vector<256x128xf32>
    %c0_5 = arith.constant 0 : index
    %c0_6 = arith.constant 0 : index
    %9 = vector.load %arg4[%c0_5, %c0_6] : memref<256x128xf32, #tpu.memory_space<vmem>>, vector<256x128xf32>
    tpu.vector_store %arg4[%c0_5, %c0_6], %8 {strides = array<i32>} : memref<256x128xf32, #tpu.memory_space<vmem>>, vector<256x128xf32>,
    return
  }
  func.func @transform_0(%arg0: i32) -> (i32, i32) {
    %c0_i32 = arith.constant 0 : i32
    %c0_i32_0 = arith.constant 0 : i32
    return %arg0, %c0_i32 : i32, i32
  }
  func.func @transform_1(%arg0: i32) -> (i32, i32) {
    %c0_i32 = arith.constant 0 : i32
    %c0_i32_0 = arith.constant 0 : i32
    %c0_i32_1 = arith.constant 0 : i32
    return %c0_i32, %c0_i32_0 : i32, i32
  }
  func.func @transform_2(%arg0: i32) -> (i32, i32) {
    %c0_i32 = arith.constant 0 : i32
    %c0_i32_0 = arith.constant 0 : i32
    %c0_i32_1 = arith.constant 0 : i32
    return %c0_i32, %c0_i32_0 : i32, i32
  }
  func.func @transform_3(%arg0: i32) -> (i32, i32) {
    %c0_i32 = arith.constant 0 : i32
    %c0_i32_0 = arith.constant 0 : i32
    return %arg0, %c0_i32 : i32, i32
  }
}

module attributes {stable_mosaic.version = 11 : i64} {
  func.func @_matmul_bn_stats_kernel(%arg0: i32, %arg1: i32, %arg2: i32, %arg3: memref<256x256xbf16, #tpu.memory_space<vmem>>, %arg4: memref<256x128xbf16, #tpu.memory_space<vmem>>, %arg5: memref<256x128xf32, #tpu.memory_space<vmem>>, %arg6: memref<1x8x128xf32, #tpu.memory_space<vmem>>, %arg7: memref<1x8x128xf32, #tpu.memory_space<vmem>>, %arg8: memref<256x128xf32, #tpu.memory_space<vmem>>) attributes {dimension_semantics = [#tpu.dimension_semantics<parallel>, #tpu.dimension_semantics<parallel>, #tpu.dimension_semantics<arbitrary>], iteration_bounds = array<i64: 2, 1, 1>, scalar_prefetch = 0 : i64, scratch_operands = 1 : i64, tpu.core_type = #tpu.core_type<tc>, window_params = [{transform_indices = @transform_0, window_bounds = array<i64: 256, 256>}, {transform_indices = @transform_1, window_bounds = array<i64: 256, 128>}, {transform_indices = @transform_2, window_bounds = array<i64: 256, 128>}, {transform_indices = @transform_3, window_bounds = array<i64: 1, 8, 128>}, {transform_indices = @transform_4, window_bounds = array<i64: 1, 8, 128>}]} {
    %c0_i32 = arith.constant 0 : i32
    %0 = arith.cmpi eq, %arg2, %c0_i32 : i32
    %1 = arith.extui %0 : i1 to i32
    %c0_i32_0 = arith.constant 0 : i32
    %2 = arith.cmpi ne, %1, %c0_i32_0 : i32
    scf.if %2 {
      %cst_10 = arith.constant 0.000000e+00 : f32
      %12 = vector.broadcast %cst_10 : f32 to vector<256x128xf32>
      %c0_11 = arith.constant 0 : index
      %c0_12 = arith.constant 0 : index
      %13 = vector.load %arg8[%c0_11, %c0_12] : memref<256x128xf32, #tpu.memory_space<vmem>>, vector<256x128xf32>
      tpu.vector_store %arg8[%c0_11, %c0_12], %12 {strides = array<i32>} : memref<256x128xf32, #tpu.memory_space<vmem>>, vector<256x128xf32>,
    } else {
    }
    %c0 = arith.constant 0 : index
    %c0_1 = arith.constant 0 : index
    %3 = vector.load %arg8[%c0, %c0_1] : memref<256x128xf32, #tpu.memory_space<vmem>>, vector<256x128xf32>
    %c0_2 = arith.constant 0 : index
    %c0_3 = arith.constant 0 : index
    %4 = vector.load %arg3[%c0_2, %c0_3] : memref<256x256xbf16, #tpu.memory_space<vmem>>, vector<256x256xbf16>
    %c0_4 = arith.constant 0 : index
    %c0_5 = arith.constant 0 : index
    %5 = vector.load %arg4[%c0_4, %c0_5] : memref<256x128xbf16, #tpu.memory_space<vmem>>, vector<256x128xbf16>
    %cst = arith.constant dense<0.000000e+00> : vector<256x128xf32>
    %6 = tpu.matmul %4, %5, %cst {dimension_numbers = #tpu.dot_dimension_numbers<[1], [0], [0], [1], [0, 0, 1, 1], [], []>} : vector<256x256xbf16>, vector<256x128xbf16>, vector<256x128xf32> -> vector<256x128xf32>
    %7 = arith.addf %3, %6 : vector<256x128xf32>
    %c0_6 = arith.constant 0 : index
    %c0_7 = arith.constant 0 : index
    %8 = vector.load %arg8[%c0_6, %c0_7] : memref<256x128xf32, #tpu.memory_space<vmem>>, vector<256x128xf32>
    tpu.vector_store %arg8[%c0_6, %c0_7], %7 {strides = array<i32>} : memref<256x128xf32, #tpu.memory_space<vmem>>, vector<256x128xf32>,
    %c0_i32_8 = arith.constant 0 : i32
    %9 = arith.cmpi eq, %arg2, %c0_i32_8 : i32
    %10 = arith.extui %9 : i1 to i32
    %c0_i32_9 = arith.constant 0 : i32
    %11 = arith.cmpi ne, %10, %c0_i32_9 : i32
    scf.if %11 {
      %c0_10 = arith.constant 0 : index
      %c0_11 = arith.constant 0 : index
      %12 = vector.load %arg8[%c0_10, %c0_11] : memref<256x128xf32, #tpu.memory_space<vmem>>, vector<256x128xf32>
      %c0_12 = arith.constant 0 : index
      %c0_13 = arith.constant 0 : index
      %13 = vector.load %arg5[%c0_12, %c0_13] : memref<256x128xf32, #tpu.memory_space<vmem>>, vector<256x128xf32>
      tpu.vector_store %arg5[%c0_12, %c0_13], %12 {strides = array<i32>} : memref<256x128xf32, #tpu.memory_space<vmem>>, vector<256x128xf32>,
      %cst_14 = arith.constant dense<0.000000e+00> : vector<128xf32>
      %14 = vector.multi_reduction <add>, %12, %cst_14 [0] : vector<256x128xf32> to vector<128xf32>
      %15 = vector.shape_cast %14 : vector<128xf32> to vector<1x128xf32>
      %16 = arith.mulf %12, %12 : vector<256x128xf32>
      %cst_15 = arith.constant dense<0.000000e+00> : vector<128xf32>
      %17 = vector.multi_reduction <add>, %16, %cst_15 [0] : vector<256x128xf32> to vector<128xf32>
      %18 = vector.shape_cast %17 : vector<128xf32> to vector<1x128xf32>
      %19 = vector.shape_cast %15 : vector<1x128xf32> to vector<1x1x128xf32>
      %20 = vector.shape_cast %19 : vector<1x1x128xf32> to vector<1x1x128xf32>
      %21 = vector.broadcast %20 : vector<1x1x128xf32> to vector<1x8x128xf32>
      %c0_16 = arith.constant 0 : index
      %c0_17 = arith.constant 0 : index
      %c0_18 = arith.constant 0 : index
      %22 = vector.load %arg6[%c0_16, %c0_17, %c0_18] : memref<1x8x128xf32, #tpu.memory_space<vmem>>, vector<1x8x128xf32>
      tpu.vector_store %arg6[%c0_16, %c0_17, %c0_18], %21 {strides = array<i32>} : memref<1x8x128xf32, #tpu.memory_space<vmem>>, vector<1x8x128xf32>,
      %23 = vector.shape_cast %18 : vector<1x128xf32> to vector<1x1x128xf32>
      %24 = vector.shape_cast %23 : vector<1x1x128xf32> to vector<1x1x128xf32>
      %25 = vector.broadcast %24 : vector<1x1x128xf32> to vector<1x8x128xf32>
      %c0_19 = arith.constant 0 : index
      %c0_20 = arith.constant 0 : index
      %c0_21 = arith.constant 0 : index
      %26 = vector.load %arg7[%c0_19, %c0_20, %c0_21] : memref<1x8x128xf32, #tpu.memory_space<vmem>>, vector<1x8x128xf32>
      tpu.vector_store %arg7[%c0_19, %c0_20, %c0_21], %25 {strides = array<i32>} : memref<1x8x128xf32, #tpu.memory_space<vmem>>, vector<1x8x128xf32>,
    } else {
    }
    return
  }
  func.func @transform_0(%arg0: i32, %arg1: i32, %arg2: i32) -> (i32, i32) {
    %c0_i32 = arith.constant 0 : i32
    return %arg0, %arg2 : i32, i32
  }
  func.func @transform_1(%arg0: i32, %arg1: i32, %arg2: i32) -> (i32, i32) {
    %c0_i32 = arith.constant 0 : i32
    return %arg2, %arg1 : i32, i32
  }
  func.func @transform_2(%arg0: i32, %arg1: i32, %arg2: i32) -> (i32, i32) {
    %c0_i32 = arith.constant 0 : i32
    return %arg0, %arg1 : i32, i32
  }
  func.func @transform_3(%arg0: i32, %arg1: i32, %arg2: i32) -> (i32, i32, i32) {
    %c0_i32 = arith.constant 0 : i32
    %c0_i32_0 = arith.constant 0 : i32
    return %arg0, %c0_i32, %arg1 : i32, i32, i32
  }
  func.func @transform_4(%arg0: i32, %arg1: i32, %arg2: i32) -> (i32, i32, i32) {
    %c0_i32 = arith.constant 0 : i32
    %c0_i32_0 = arith.constant 0 : i32
    return %arg0, %c0_i32, %arg1 : i32, i32, i32
  }
}

</mosaic_0001>

<bundles_post_ra>
// kernel: base_stem_forward.3
= control target key start
LH: loop header
LB: loop body
LE: loop exit
PB: predicated region body
PF: predicated region fallthrough
CT: control target
= control target key end

     0   :  { %s447_s12 = smov 0   ;;  %s606_s0 = inlined_call_operand.vmem [shape: f32[512,128], index: 0, kind: input, shape index: {}]   ;;  %s607_s1 = inlined_call_operand.vmem [shape: f32[1,128], index: 1, kind: input, shape index: {}]   ;;  %s608_s2 = inlined_call_operand.vmem [shape: f32[1,128], index: 2, kind: input, shape index: {}]   ;;  %s609_s3 = inlined_call_operand.vmem [shape: f32[512,128], index: 3, kind: output, shape index: {}]  }
   0x1 LB: > { %s398_s13 = sadd.s32 4294967295, %s425_s12   ;;  %p402_p0 = scmp.ge.s32.totalorder %s425_s12, 1  ;;  %s425_s12 = sphi %s447_s12, %s13_s12  }
   0x2   : > { %p138_p1 = scmp.lt.s32.totalorder %s425_s12, 3 }
   0x4   : > { %p139_p2 = pnand %p402_p0, %p138_p1 }
   0x5   : > { %s403_s14 = sshll.u32 (!%p139_p2), %s398_s13, 5 }
   0x6   : > { %142 = sbr.rel (%p139_p2) target bundleno = 53 (0x35), region = 32  ;;  %p163_p3 = scmp.lt.s32.totalorder (!%p139_p2), %s403_s14, 63 }
   0xb   : > { %s611_s14 = smov (!%p163_p3, %s403_s14), 63  ;;  %v458_v0 = vld [vmem:[%s607_s1] ss:$0 sm:$0xff] }
   0xc   : > { %s404_s17 = sshll.u32 %s611_s14, 3  ;;  %v468_v1 = vld [vmem:[%s608_s2] ss:$0 sm:$0xff] }
   0xd   : > { %s463_s20 = scalar_lea.vmem %s606_s0, %s404_s17  ;;  %s491_s25 = scalar_lea.vmem %s609_s3, %s404_s17 }
   0xe   : > { %v174_v2 = vld [vmem:[%s463_s20] sm:$0xff]  ;;  %v175_v3 = vld [vmem:[%s463_s20 + $0x8] sm:$0xff]  ;;  %v176_v4 = vld [vmem:[%s463_s20 + $0x10] sm:$0xff] }
   0xf   : > { %v210_v5 = vmul.f32 %v458_v0, %v174_v2  ;;  %v211_v6 = vmul.f32 %v458_v0, %v175_v3  ;;  %v212_v7 = vmul.f32 %v458_v0, %v176_v4  ;;  %v177_v8 = vld [vmem:[%s463_s20 + $0x18] sm:$0xff]  ;;  %v178_v9 = vld [vmem:[%s463_s20 + $0x20] sm:$0xff]  ;;  %v179_v10 = vld [vmem:[%s463_s20 + $0x28] sm:$0xff] }
  0x10   : > { %v213_v11 = vmul.f32 %v458_v0, %v177_v8  ;;  %v214_v12 = vmul.f32 %v458_v0, %v178_v9  ;;  %v215_v13 = vmul.f32 %v458_v0, %v179_v10  ;;  %v180_v14 = vld [vmem:[%s463_s20 + $0x30] sm:$0xff]  ;;  %v181_v15 = vld [vmem:[%s463_s20 + $0x38] sm:$0xff]  ;;  %v182_v24 = vld [vmem:[%s463_s20 + $0x40] sm:$0xff] }
  0x11   : > { %v246_v16 = vadd.f32 %v468_v1, %v210_v5  ;;  %v247_v17 = vadd.f32 %v468_v1, %v211_v6  ;;  %v248_v18 = vadd.f32 %v468_v1, %v212_v7  ;;  %v216_v19 = vmul.f32 %v458_v0, %v180_v14  ;;  %v183_v25 = vld [vmem:[%s463_s20 + $0x48] sm:$0xff]  ;;  %v184_v26 = vld [vmem:[%s463_s20 + $0x50] sm:$0xff]  ;;  %v185_v31 = vld [vmem:[%s463_s20 + $0x58] sm:$0xff] }
  0x12   : > { %v249_v20 = vadd.f32 %v468_v1, %v213_v11  ;;  %v250_v21 = vadd.f32 %v468_v1, %v214_v12  ;;  %v251_v22 = vadd.f32 %v468_v1, %v215_v13  ;;  %v217_v23 = vmul.f32 %v458_v0, %v181_v15  ;;  %v186_v32 = vld [vmem:[%s463_s20 + $0x60] sm:$0xff]  ;;  %v187_v33 = vld [vmem:[%s463_s20 + $0x68] sm:$0xff]  ;;  %v188_v37 = vld [vmem:[%s463_s20 + $0x70] sm:$0xff] }
  0x13   : > { %v278_v27 = vmax.f32 %v246_v16, 0.0  ;;  %v279_v28 = vmax.f32 %v247_v17, 0.0  ;;  %v280_v29 = vmax.f32 %v248_v18, 0.0  ;;  %v252_v30 = vadd.f32 %v468_v1, %v216_v19  ;;  %v189_v42 = vld [vmem:[%s463_s20 + $0x78] sm:$0xff]  ;;  %v190_v54 = vld [vmem:[%s463_s20 + $0x80] sm:$0xff]  ;;  %v191_v55 = vld [vmem:[%s463_s20 + $0x88] sm:$0xff] }
  0x14   : > { %v281_v34 = vmax.f32 %v249_v20, 0.0  ;;  %v282_v35 = vmax.f32 %v250_v21, 0.0  ;;  %v253_v36 = vadd.f32 %v468_v1, %v217_v23  ;;  %v283_v38 = vmax.f32 %v251_v22, 0.0  ;;  %v192_v56 = vld [vmem:[%s463_s20 + $0x90] sm:$0xff]  ;;  %v193_v59 = vld [vmem:[%s463_s20 + $0x98] sm:$0xff]  ;;  %v194_v63 = vld [vmem:[%s463_s20 + $0xa0] sm:$0xff] }
  0x15   : > { %310 = vst [vmem:[%s491_s25] sm:$0xff] %v278_v27  ;;  %v218_v39 = vmul.f32 %v458_v0, %v182_v24  ;;  %v219_v40 = vmul.f32 %v458_v0, %v183_v25  ;;  %v220_v41 = vmul.f32 %v458_v0, %v184_v26  ;;  %v284_v43 = vmax.f32 %v252_v30, 0.0  ;;  %v195_v6 = vld [vmem:[%s463_s20 + $0xa8] sm:$0xff]  ;;  %v196_v10 = vld [vmem:[%s463_s20 + $0xb0] sm:$0xff]  ;;  %v197_v14 = vld [vmem:[%s463_s20 + $0xb8] sm:$0xff] }
  0x16   : > { %311 = vst [vmem:[%s491_s25 + $0x8] sm:$0xff] %v279_v28  ;;  %v221_v44 = vmul.f32 %v458_v0, %v185_v31  ;;  %v222_v45 = vmul.f32 %v458_v0, %v186_v32  ;;  %v223_v46 = vmul.f32 %v458_v0, %v187_v33  ;;  %v224_v50 = vmul.f32 %v458_v0, %v188_v37  ;;  %v198_v18 = vld [vmem:[%s463_s20 + $0xc0] sm:$0xff]  ;;  %v199_v22 = vld [vmem:[%s463_s20 + $0xc8] sm:$0xff]  ;;  %v200_v26 = vld [vmem:[%s463_s20 + $0xd0] sm:$0xff] }
  0x17   : > { %312 = vst [vmem:[%s491_s25 + $0x10] sm:$0xff] %v280_v29  ;;  %v254_v47 = vadd.f32 %v468_v1, %v218_v39  ;;  %v255_v48 = vadd.f32 %v468_v1, %v219_v40  ;;  %v256_v49 = vadd.f32 %v468_v1, %v220_v41  ;;  %v285_v51 = vmax.f32 %v253_v36, 0.0  ;;  %v201_v30 = vld [vmem:[%s463_s20 + $0xd8] sm:$0xff] }
  0x18   : > { %313 = vst [vmem:[%s491_s25 + $0x18] sm:$0xff] %v281_v34  ;;  %v257_v52 = vadd.f32 %v468_v1, %v221_v44  ;;  %v225_v53 = vmul.f32 %v458_v0, %v189_v42  ;;  %v258_v58 = vadd.f32 %v468_v1, %v222_v45  ;;  %v259_v62 = vadd.f32 %v468_v1, %v223_v46  ;;  %v202_v34 = vld [vmem:[%s463_s20 + $0xe0] sm:$0xff]  ;;  %v204_v42 = vld [vmem:[%s463_s20 + $0xf0] sm:$0xff]  ;;  %v205_v46 = vld [vmem:[%s463_s20 + $0xf8] sm:$0xff] }
  0x19   : > { %314 = vst [vmem:[%s491_s25 + $0x20] sm:$0xff] %v282_v35  ;;  %v286_v57 = vmax.f32 %v254_v47, 0.0  ;;  %v287_v60 = vmax.f32 %v255_v48, 0.0  ;;  %v288_v61 = vmax.f32 %v256_v49, 0.0  ;;  %v260_v2 = vadd.f32 %v468_v1, %v224_v50 }
  0x1a   : > { %315 = vst [vmem:[%s491_s25 + $0x28] sm:$0xff] %v283_v38  ;;  %v226_v3 = vmul.f32 %v458_v0, %v190_v54  ;;  %v227_v4 = vmul.f32 %v458_v0, %v191_v55  ;;  %v228_v5 = vmul.f32 %v458_v0, %v192_v56  ;;  %v289_v7 = vmax.f32 %v257_v52, 0.0  ;;  %v203_v38 = vld [vmem:[%s463_s20 + $0xe8] sm:$0xff] }
  0x1b   : > { %316 = vst [vmem:[%s491_s25 + $0x30] sm:$0xff] %v284_v43  ;;  %v261_v8 = vadd.f32 %v468_v1, %v225_v53  ;;  %v229_v9 = vmul.f32 %v458_v0, %v193_v59  ;;  %v290_v11 = vmax.f32 %v258_v58, 0.0  ;;  %v230_v13 = vmul.f32 %v458_v0, %v194_v63 }
  0x1c   : > { %317 = vst [vmem:[%s491_s25 + $0x38] sm:$0xff] %v285_v51  ;;  %v262_v12 = vadd.f32 %v468_v1, %v226_v3  ;;  %v291_v15 = vmax.f32 %v259_v62, 0.0  ;;  %v263_v16 = vadd.f32 %v468_v1, %v227_v4  ;;  %v231_v17 = vmul.f32 %v458_v0, %v195_v6 }
  0x1d   : > { %318 = vst [vmem:[%s491_s25 + $0x40] sm:$0xff] %v286_v57  ;;  %v292_v19 = vmax.f32 %v260_v2, 0.0  ;;  %v264_v20 = vadd.f32 %v468_v1, %v228_v5  ;;  %v232_v21 = vmul.f32 %v458_v0, %v196_v10  ;;  %v293_v23 = vmax.f32 %v261_v8, 0.0 }
  0x1e   : > { %319 = vst [vmem:[%s491_s25 + $0x48] sm:$0xff] %v287_v60  ;;  %v265_v24 = vadd.f32 %v468_v1, %v229_v9  ;;  %v233_v25 = vmul.f32 %v458_v0, %v197_v14  ;;  %v294_v27 = vmax.f32 %v262_v12, 0.0  ;;  %v266_v28 = vadd.f32 %v468_v1, %v230_v13 }
  0x1f   : > { %320 = vst [vmem:[%s491_s25 + $0x50] sm:$0xff] %v288_v61  ;;  %v234_v29 = vmul.f32 %v458_v0, %v198_v18  ;;  %v295_v31 = vmax.f32 %v263_v16, 0.0  ;;  %v267_v32 = vadd.f32 %v468_v1, %v231_v17  ;;  %v235_v33 = vmul.f32 %v458_v0, %v199_v22 }
  0x20   : > { %321 = vst [vmem:[%s491_s25 + $0x58] sm:$0xff] %v289_v7  ;;  %v296_v35 = vmax.f32 %v264_v20, 0.0  ;;  %v268_v36 = vadd.f32 %v468_v1, %v232_v21  ;;  %v236_v37 = vmul.f32 %v458_v0, %v200_v26  ;;  %v297_v39 = vmax.f32 %v265_v24, 0.0 }
  0x21   : > { %322 = vst [vmem:[%s491_s25 + $0x60] sm:$0xff] %v290_v11  ;;  %v269_v40 = vadd.f32 %v468_v1, %v233_v25  ;;  %v237_v41 = vmul.f32 %v458_v0, %v201_v30  ;;  %v298_v43 = vmax.f32 %v266_v28, 0.0  ;;  %v270_v44 = vadd.f32 %v468_v1, %v234_v29 }
  0x22   : > { %323 = vst [vmem:[%s491_s25 + $0x68] sm:$0xff] %v291_v15  ;;  %v238_v45 = vmul.f32 %v458_v0, %v202_v34  ;;  %v299_v47 = vmax.f32 %v267_v32, 0.0  ;;  %v271_v48 = vadd.f32 %v468_v1, %v235_v33  ;;  %v239_v49 = vmul.f32 %v458_v0, %v203_v38 }
  0x23   : > { %324 = vst [vmem:[%s491_s25 + $0x70] sm:$0xff] %v292_v19  ;;  %v300_v50 = vmax.f32 %v268_v36, 0.0  ;;  %v272_v51 = vadd.f32 %v468_v1, %v236_v37  ;;  %v240_v52 = vmul.f32 %v458_v0, %v204_v42  ;;  %v301_v53 = vmax.f32 %v269_v40, 0.0 }
  0x24   : > { %325 = vst [vmem:[%s491_s25 + $0x78] sm:$0xff] %v293_v23  ;;  %v273_v54 = vadd.f32 %v468_v1, %v237_v41  ;;  %v241_v55 = vmul.f32 %v458_v0, %v205_v46  ;;  %v302_v56 = vmax.f32 %v270_v44, 0.0  ;;  %v274_v57 = vadd.f32 %v468_v1, %v238_v45 }
  0x25   : > { %326 = vst [vmem:[%s491_s25 + $0x80] sm:$0xff] %v294_v27  ;;  %v303_v58 = vmax.f32 %v271_v48, 0.0  ;;  %v275_v59 = vadd.f32 %v468_v1, %v239_v49  ;;  %v304_v60 = vmax.f32 %v272_v51, 0.0  ;;  %v276_v61 = vadd.f32 %v468_v1, %v240_v52 }
  0x26   : > { %327 = vst [vmem:[%s491_s25 + $0x88] sm:$0xff] %v295_v31  ;;  %v305_v0 = vmax.f32 %v273_v54, 0.0  ;;  %v277_v62 = vadd.f32 %v468_v1, %v241_v55  ;;  %v306_v63 = vmax.f32 %v274_v57, 0.0 }
  0x27   : > { %328 = vst [vmem:[%s491_s25 + $0x90] sm:$0xff] %v296_v35  ;;  %v307_v2 = vmax.f32 %v275_v59, 0.0  ;;  %v308_v3 = vmax.f32 %v276_v61, 0.0 }
  0x28   : > { %329 = vst [vmem:[%s491_s25 + $0x98] sm:$0xff] %v297_v39  ;;  %v309_v4 = vmax.f32 %v277_v62, 0.0 }
  0x29   : > { %330 = vst [vmem:[%s491_s25 + $0xa0] sm:$0xff] %v298_v43 }
  0x2a   : > { %331 = vst [vmem:[%s491_s25 + $0xa8] sm:$0xff] %v299_v47 }
  0x2b   : > { %332 = vst [vmem:[%s491_s25 + $0xb0] sm:$0xff] %v300_v50 }
  0x2c   : > { %333 = vst [vmem:[%s491_s25 + $0xb8] sm:$0xff] %v301_v53 }
  0x2d   : > { %334 = vst [vmem:[%s491_s25 + $0xc0] sm:$0xff] %v302_v56 }
  0x2e   : > { %335 = vst [vmem:[%s491_s25 + $0xc8] sm:$0xff] %v303_v58 }
  0x2f   : > { %336 = vst [vmem:[%s491_s25 + $0xd0] sm:$0xff] %v304_v60 }
  0x30   : > { %337 = vst [vmem:[%s491_s25 + $0xd8] sm:$0xff] %v305_v0 }
  0x31   : > { %338 = vst [vmem:[%s491_s25 + $0xe0] sm:$0xff] %v306_v63 }
  0x32   : > { %339 = vst [vmem:[%s491_s25 + $0xe8] sm:$0xff] %v307_v2 }
  0x33   : > { %340 = vst [vmem:[%s491_s25 + $0xf0] sm:$0xff] %v308_v3 }
  0x34   : > { %341 = vst [vmem:[%s491_s25 + $0xf8] sm:$0xff] %v309_v4 }
  0x35 PF: > { %s13_s12 = sadd.s32 1, %s425_s12  }
  0x36   : > { %p10_p4 = scmp.ge.s32.totalorder %s13_s12, 4  }
  0x38   :  { %12 = sbr.rel (!%p10_p4) target bundleno = 1 (0x1), region = 62 }

// kernel: base_stem_forward.2
= control target key start
LH: loop header
LB: loop body
LE: loop exit
PB: predicated region body
PF: predicated region fallthrough
CT: control target
= control target key end

     0   :  { %s1651_s15 = smov 0   ;;  %s1653_s16 = smov 0   ;;  %s1940_s0 = inlined_call_operand.vmem [shape: bf16[512,256], index: 0, kind: input, shape index: {}]   ;;  %s1941_s1 = inlined_call_operand.vmem [shape: bf16[256,128], index: 1, kind: input, shape index: {}]   ;;  %s1942_s2 = inlined_call_operand.vmem [shape: f32[512,128], index: 2, kind: output, shape index: {0}]   ;;  %s1943_s3 = inlined_call_operand.vmem [shape: f32[2,8,128], index: 3, kind: output, shape index: {1}]   ;;  %s1944_s4 = inlined_call_operand.vmem [shape: f32[2,8,128], index: 4, kind: output, shape index: {2}]  }
   0x1   :  { %s1655_s17 = smov 0  }
   0x2 LB: > { %s34_s18 = sadd.s32 1, %s1620_s16  ;;  %p1311_p0 = scmp.ge.s32.totalorder %s1624_s17, 1  ;;  %s1624_s17 = sphi %s1655_s17, %s15_s17   ;;  %s1620_s16 = sphi %s1653_s16, %s1946_s16   ;;  %s1616_s15 = sphi %s1651_s15, %s1945_s15  }
   0x3   : > { %p36_p1 = scmp.ge.s32.totalorder %s34_s18, 2  ;;  %p217_p2 = scmp.lt.s32.totalorder %s1624_s17, 3 }
   0x5   : > { %s1948_s18 = smov (%p36_p1, %s34_s18), 0  ;;  %p218_p3 = pnand %p1311_p0, %p217_p2 }
   0x6   : > { %s1312_s5 = sshll.u32 (!%p218_p3), %s1616_s15, 5  ;;  %p303_p5 = scmp.lt.s32.totalorder (!%p218_p3), %s1616_s15, 1 }
   0x7   : > { %221 = sbr.rel (%p218_p3) target bundleno = 342 (0x156), region = 28  ;;  %p275_p4 = scmp.lt.s32.totalorder (!%p218_p3), %s1312_s5, 63 }
   0xc   : > { %v1553_v0 = vld [vmem:[%s1941_s1 + $0x38] sm:$0xff]  ;;  %v1552_v2 = vld [vmem:[%s1941_s1 + $0x30] sm:$0xff]  ;;  %v1551_v4 = vld [vmem:[%s1941_s1 + $0x28] sm:$0xff]  ;;  %s1950_s5 = smov (!%p275_p4, %s1312_s5), 63  ;;  %s1952_s15 = smov (!%p303_p5, %s1616_s15), 1 }
   0xd   : > { %v1561_v1 = vld [vmem:[%s1941_s1 + $0x78] sm:$0xff]  ;;  %705 = vmatpush.bf16.msra.mxu0 %v1553_v0  ;;  %v1560_v3 = vld [vmem:[%s1941_s1 + $0x70] sm:$0xff]  ;;  %1562 = vmatpush.bf16.msra.mxu2 %v1553_v0  ;;  %v1559_v5 = vld [vmem:[%s1941_s1 + $0x68] sm:$0xff]  ;;  %s1513_s22 = sshll.u32 %s1950_s5, 3  ;;  %s1317_s5 = sshll.u32 %s1952_s15, 3 }
   0xe   : > { %794 = vmatpush.bf16.msra.mxu1 %v1561_v1  ;;  %1570 = vmatpush.bf16.msra.mxu3 %v1561_v1  ;;  %v1550_v6 = vld [vmem:[%s1941_s1 + $0x20] sm:$0xff]  ;;  %v1549_v8 = vld [vmem:[%s1941_s1 + $0x18] sm:$0xff]  ;;  %v1548_v10 = vld [vmem:[%s1941_s1 + $0x10] sm:$0xff]  ;;  %s1722_s29 = scalar_lea.vmem %s1940_s0, %s1513_s22  ;;  %s1799_s11 = scalar_lea.vmem %s1942_s2, %s1513_s22 }
   0xf   : > { %v1558_v7 = vld [vmem:[%s1941_s1 + $0x60] sm:$0xff]  ;;  %v1557_v9 = vld [vmem:[%s1941_s1 + $0x58] sm:$0xff]  ;;  %v1556_v11 = vld [vmem:[%s1941_s1 + $0x50] sm:$0xff]  ;;  %s309_s14 = scalar_lea.vmem %s1943_s3, %s1317_s5  ;;  %s316_s21 = scalar_lea.vmem %s1944_s4, %s1317_s5 }
  0x10   : > { %v1547_v12 = vld [vmem:[%s1941_s1 + $0x8] sm:$0xff]  ;;  %v1546_v14 = vld [vmem:[%s1941_s1] sm:$0xff]  ;;  %v1329_v28 = vld [vmem:[%s1722_s29 + $0x10] sm:$0xf] }
  0x11   : > { %706 = vmatpush.bf16.msra.mxu0 %v1552_v2  ;;  %1563 = vmatpush.bf16.msra.mxu2 %v1552_v2  ;;  %v1555_v13 = vld [vmem:[%s1941_s1 + $0x48] sm:$0xff]  ;;  %v1554_v15 = vld [vmem:[%s1941_s1 + $0x40] sm:$0xff]  ;;  %v1517_v29 = vld [vmem:[%s1722_s29 + $0x14] sm:$0xf0] }
  0x12   : > { %795 = vmatpush.bf16.msra.mxu1 %v1560_v3  ;;  %1571 = vmatpush.bf16.msra.mxu3 %v1560_v3  ;;  %v1321_v16 = vld [vmem:[%s1722_s29] sm:$0xf]  ;;  %v1515_v17 = vld [vmem:[%s1722_s29 + $0x4] sm:$0xf0]  ;;  %v1514_v18 = vld [vmem:[%s1722_s29 + $0x4] sm:$0xf]  ;;  %v1330_v36 = vor.u32 %v1517_v29, %v1329_v28 }
  0x13   : > { %v1323_v19 = vld [vmem:[%s1722_s29 + $0x8] sm:$0xf0]  ;;  %v1385_v20 = vld [vmem:[%s1722_s29 + $0x80] sm:$0xf]  ;;  %v1531_v21 = vld [vmem:[%s1722_s29 + $0x84] sm:$0xf0]  ;;  %v1322_v24 = vor.u32 %v1515_v17, %v1321_v16 }
  0x14   : > { %v1530_v22 = vld [vmem:[%s1722_s29 + $0x84] sm:$0xf]  ;;  %v1387_v23 = vld [vmem:[%s1722_s29 + $0x88] sm:$0xf0]  ;;  %v1326_v25 = vor.u32 %v1514_v18, %v1323_v19  ;;  %v1386_v26 = vor.u32 %v1531_v21, %v1385_v20  ;;  %v1516_v30 = vld [vmem:[%s1722_s29 + $0x14] sm:$0xf] }
  0x15   : > { %707 = vmatpush.bf16.msra.mxu0 %v1551_v4  ;;  %1564 = vmatpush.bf16.msra.mxu2 %v1551_v4  ;;  %v1390_v27 = vor.u32 %v1530_v22, %v1387_v23  ;;  %v1331_v31 = vld [vmem:[%s1722_s29 + $0x18] sm:$0xf0]  ;;  %v1393_v32 = vld [vmem:[%s1722_s29 + $0x90] sm:$0xf]  ;;  %v1533_v33 = vld [vmem:[%s1722_s29 + $0x94] sm:$0xf0] }
  0x16   : > { %796 = vmatpush.bf16.msra.mxu1 %v1559_v5  ;;  %1572 = vmatpush.bf16.msra.mxu3 %v1559_v5  ;;  %v1532_v34 = vld [vmem:[%s1722_s29 + $0x94] sm:$0xf]  ;;  %v1395_v35 = vld [vmem:[%s1722_s29 + $0x98] sm:$0xf0]  ;;  %v1334_v37 = vor.u32 %v1516_v30, %v1331_v31  ;;  %v1394_v38 = vor.u32 %v1533_v33, %v1393_v32  ;;  %v1337_v40 = vld [vmem:[%s1722_s29 + $0x20] sm:$0xf] }
  0x17   : > { %v1398_v39 = vor.u32 %v1532_v34, %v1395_v35  ;;  %v1519_v41 = vld [vmem:[%s1722_s29 + $0x24] sm:$0xf0]  ;;  %v1518_v42 = vld [vmem:[%s1722_s29 + $0x24] sm:$0xf]  ;;  %v1339_v43 = vld [vmem:[%s1722_s29 + $0x28] sm:$0xf0] }
  0x18   : > { %v1401_v44 = vld [vmem:[%s1722_s29 + $0xa0] sm:$0xf]  ;;  %v1535_v45 = vld [vmem:[%s1722_s29 + $0xa4] sm:$0xf0]  ;;  %v1534_v46 = vld [vmem:[%s1722_s29 + $0xa4] sm:$0xf]  ;;  %v1338_v48 = vor.u32 %v1519_v41, %v1337_v40  ;;  %v1342_v49 = vor.u32 %v1518_v42, %v1339_v43 }
  0x19   : > { %708 = vmatpush.bf16.msra.mxu0 %v1550_v6  ;;  %1565 = vmatpush.bf16.msra.mxu2 %v1550_v6  ;;  %v1403_v47 = vld [vmem:[%s1722_s29 + $0xa8] sm:$0xf0]  ;;  %v1402_v50 = vor.u32 %v1535_v45, %v1401_v44  ;;  %v1345_v52 = vld [vmem:[%s1722_s29 + $0x30] sm:$0xf]  ;;  %v1521_v53 = vld [vmem:[%s1722_s29 + $0x34] sm:$0xf0] }
  0x1a   : > { %797 = vmatpush.bf16.msra.mxu1 %v1558_v7  ;;  %1573 = vmatpush.bf16.msra.mxu3 %v1558_v7  ;;  %v1406_v51 = vor.u32 %v1534_v46, %v1403_v47  ;;  %v1520_v54 = vld [vmem:[%s1722_s29 + $0x34] sm:$0xf]  ;;  %v1347_v55 = vld [vmem:[%s1722_s29 + $0x38] sm:$0xf0]  ;;  %v1409_v56 = vld [vmem:[%s1722_s29 + $0xb0] sm:$0xf]  ;;  %v1346_v60 = vor.u32 %v1521_v53, %v1345_v52 }
  0x1b   : > { %v1537_v57 = vld [vmem:[%s1722_s29 + $0xb4] sm:$0xf0]  ;;  %v1536_v58 = vld [vmem:[%s1722_s29 + $0xb4] sm:$0xf]  ;;  %v1411_v59 = vld [vmem:[%s1722_s29 + $0xb8] sm:$0xf0]  ;;  %v1350_v61 = vor.u32 %v1520_v54, %v1347_v55 }
  0x1c   : > { %v1410_v62 = vor.u32 %v1537_v57, %v1409_v56  ;;  %v1414_v63 = vor.u32 %v1536_v58, %v1411_v59  ;;  %v1353_v0 = vld [vmem:[%s1722_s29 + $0x40] sm:$0xf]  ;;  %v1523_v1 = vld [vmem:[%s1722_s29 + $0x44] sm:$0xf0]  ;;  %v1522_v2 = vld [vmem:[%s1722_s29 + $0x44] sm:$0xf] }
  0x1d   : > { %709 = vmatpush.bf16.msra.mxu0 %v1549_v8  ;;  %1566 = vmatpush.bf16.msra.mxu2 %v1549_v8  ;;  %v1355_v3 = vld [vmem:[%s1722_s29 + $0x48] sm:$0xf0]  ;;  %v1417_v4 = vld [vmem:[%s1722_s29 + $0xc0] sm:$0xf]  ;;  %v1539_v5 = vld [vmem:[%s1722_s29 + $0xc4] sm:$0xf0]  ;;  %v1354_v8 = vor.u32 %v1523_v1, %v1353_v0 }
  0x1e   : > { %798 = vmatpush.bf16.msra.mxu1 %v1557_v9  ;;  %1574 = vmatpush.bf16.msra.mxu3 %v1557_v9  ;;  %v1538_v6 = vld [vmem:[%s1722_s29 + $0xc4] sm:$0xf]  ;;  %v1419_v7 = vld [vmem:[%s1722_s29 + $0xc8] sm:$0xf0]  ;;  %v1358_v9 = vor.u32 %v1522_v2, %v1355_v3  ;;  %v1425_v16 = vld [vmem:[%s1722_s29 + $0xd0] sm:$0xf] }
  0x1f   : > { %v1541_v17 = vld [vmem:[%s1722_s29 + $0xd4] sm:$0xf0]  ;;  %v1540_v18 = vld [vmem:[%s1722_s29 + $0xd4] sm:$0xf]  ;;  %v1427_v19 = vld [vmem:[%s1722_s29 + $0xd8] sm:$0xf0] }
  0x20   : > { %v1426_v22 = vor.u32 %v1541_v17, %v1425_v16  ;;  %v1430_v23 = vor.u32 %v1540_v18, %v1427_v19  ;;  %v1433_v28 = vld [vmem:[%s1722_s29 + $0xe0] sm:$0xf]  ;;  %v1543_v29 = vld [vmem:[%s1722_s29 + $0xe4] sm:$0xf0]  ;;  %v1542_v30 = vld [vmem:[%s1722_s29 + $0xe4] sm:$0xf] }
  0x21   : > { %710 = vmatpush.bf16.msra.mxu0 %v1548_v10  ;;  %1567 = vmatpush.bf16.msra.mxu2 %v1548_v10  ;;  %v1418_v10 = vor.u32 %v1539_v5, %v1417_v4  ;;  %v1435_v31 = vld [vmem:[%s1722_s29 + $0xe8] sm:$0xf0]  ;;  %v1434_v34 = vor.u32 %v1543_v29, %v1433_v28  ;;  %v1441_v40 = vld [vmem:[%s1722_s29 + $0xf0] sm:$0xf]  ;;  %v1545_v41 = vld [vmem:[%s1722_s29 + $0xf4] sm:$0xf0] }
  0x22   : > { %799 = vmatpush.bf16.msra.mxu1 %v1556_v11  ;;  %1575 = vmatpush.bf16.msra.mxu3 %v1556_v11  ;;  %v1422_v11 = vor.u32 %v1538_v6, %v1419_v7  ;;  %v1438_v35 = vor.u32 %v1542_v30, %v1435_v31  ;;  %v1544_v42 = vld [vmem:[%s1722_s29 + $0xf4] sm:$0xf]  ;;  %v1443_v43 = vld [vmem:[%s1722_s29 + $0xf8] sm:$0xf0]  ;;  %v1442_v46 = vor.u32 %v1545_v41, %v1441_v40 }
  0x23   : > { %v1446_v47 = vor.u32 %v1544_v42, %v1443_v43 }
  0x25   : > { %711 = vmatpush.bf16.msra.mxu0 %v1547_v12  ;;  %1568 = vmatpush.bf16.msra.mxu2 %v1547_v12  ;;  %v1361_v12 = vld [vmem:[%s1722_s29 + $0x50] sm:$0xf] }
  0x26   : > { %800 = vmatpush.bf16.msra.mxu1 %v1555_v13  ;;  %1576 = vmatpush.bf16.msra.mxu3 %v1555_v13  ;;  %v1525_v13 = vld [vmem:[%s1722_s29 + $0x54] sm:$0xf0] }
  0x27   : > { %v1362_v20 = vor.u32 %v1525_v13, %v1361_v12 }
  0x29   : > { %712 = vmatpush.bf16.msra.mxu0 %v1546_v14  ;;  %1569 = vmatpush.bf16.msra.mxu2 %v1546_v14  ;;  %v1524_v14 = vld [vmem:[%s1722_s29 + $0x54] sm:$0xf] }
  0x2a   : > { %801 = vmatpush.bf16.msra.mxu1 %v1554_v15  ;;  %1577 = vmatpush.bf16.msra.mxu3 %v1554_v15  ;;  %v1363_v15 = vld [vmem:[%s1722_s29 + $0x58] sm:$0xf0] }
  0x2b   : > { %v1366_v21 = vor.u32 %v1524_v14, %v1363_v15 }
  0x2c   : > { %713 = vmatmul.bf16.vlgmr.msra.gmra.mxu0 %v1322_v24  ;;  %753 = vmatmul.bf16.vlgmr.msra.gmra.mxu2 %v1386_v26  ;;  %v1369_v24 = vld [vmem:[%s1722_s29 + $0x60] sm:$0xf]  ;;  %v1526_v26 = vld [vmem:[%s1722_s29 + $0x64] sm:$0xf] }
  0x2d   : > { %802 = vmatmul.bf16.vlgmr.msra.gmra.mxu1 %v1326_v25  ;;  %842 = vmatmul.bf16.vlgmr.msra.gmra.mxu3 %v1390_v27  ;;  %v1527_v25 = vld [vmem:[%s1722_s29 + $0x64] sm:$0xf0]  ;;  %v1371_v27 = vld [vmem:[%s1722_s29 + $0x68] sm:$0xf0] }
  0x2e   : > { %v1370_v32 = vor.u32 %v1527_v25, %v1369_v24  ;;  %v1374_v33 = vor.u32 %v1526_v26, %v1371_v27 }
  0x3c   : > { %718 = vmatmul.bf16.gmra.mxu0 %v1330_v36  ;;  %758 = vmatmul.bf16.gmra.mxu2 %v1394_v38  ;;  %v1377_v36 = vld [vmem:[%s1722_s29 + $0x70] sm:$0xf]  ;;  %v1528_v38 = vld [vmem:[%s1722_s29 + $0x74] sm:$0xf] }
  0x3d   : > { %807 = vmatmul.bf16.gmra.mxu1 %v1334_v37  ;;  %847 = vmatmul.bf16.gmra.mxu3 %v1398_v39  ;;  %v1529_v37 = vld [vmem:[%s1722_s29 + $0x74] sm:$0xf0]  ;;  %v1379_v39 = vld [vmem:[%s1722_s29 + $0x78] sm:$0xf0] }
  0x3e   : > { %v1378_v44 = vor.u32 %v1529_v37, %v1377_v36  ;;  %v1382_v45 = vor.u32 %v1528_v38, %v1379_v39 }
  0x4c   : > { %723 = vmatmul.bf16.gmra.mxu0 %v1338_v48  ;;  %763 = vmatmul.bf16.gmra.mxu2 %v1402_v50 }
  0x4d   : > { %812 = vmatmul.bf16.gmra.mxu1 %v1342_v49  ;;  %852 = vmatmul.bf16.gmra.mxu3 %v1406_v51 }
  0x5c   : > { %728 = vmatmul.bf16.gmra.mxu0 %v1346_v60  ;;  %768 = vmatmul.bf16.gmra.mxu2 %v1410_v62 }
  0x5d   : > { %817 = vmatmul.bf16.gmra.mxu1 %v1350_v61  ;;  %857 = vmatmul.bf16.gmra.mxu3 %v1414_v63 }
  0x6c   : > { %733 = vmatmul.bf16.gmra.mxu0 %v1354_v8  ;;  %773 = vmatmul.bf16.gmra.mxu2 %v1418_v10 }
  0x6d   : > { %822 = vmatmul.bf16.gmra.mxu1 %v1358_v9  ;;  %862 = vmatmul.bf16.gmra.mxu3 %v1422_v11 }
  0x7c   : > { %738 = vmatmul.bf16.gmra.mxu0 %v1362_v20  ;;  %778 = vmatmul.bf16.gmra.mxu2 %v1426_v22 }
  0x7d   : > { %827 = vmatmul.bf16.gmra.mxu1 %v1366_v21  ;;  %867 = vmatmul.bf16.gmra.mxu3 %v1430_v23 }
  0x8c   : > { %743 = vmatmul.bf16.gmra.mxu0 %v1370_v32  ;;  %783 = vmatmul.bf16.gmra.mxu2 %v1434_v34 }
  0x8d   : > { %832 = vmatmul.bf16.gmra.mxu1 %v1374_v33  ;;  %872 = vmatmul.bf16.gmra.mxu3 %v1438_v35 }
  0x9c   : > { %748 = vmatmul.bf16.gmra.mxu0 %v1378_v44  ;;  %788 = vmatmul.bf16.gmra.mxu2 %v1442_v46 }
  0x9d   : > { %837 = vmatmul.bf16.gmra.mxu1 %v1382_v45  ;;  %877 = vmatmul.bf16.gmra.mxu3 %v1446_v47 }
  0xa9   : > { %v714_v48 = vpop.f32.mrf.mxu0 }
  0xaa   : > { %v803_v49 = vpop.f32.mrf.mxu1 }
  0xab   : > { %v804_v50 = vadd.f32 %v803_v49, %v714_v48 }
  0xad   : > { %982 = vst [vmem:[%s1799_s11] sm:$0xff] %v804_v50  ;;  %v1051_v57 = vmul.f32 %v804_v50, %v804_v50 }
  0xaf   : > { %v754_v51 = vpop.f32.mrf.mxu2 }
  0xb0   : > { %v843_v52 = vpop.f32.mrf.mxu3 }
  0xb1   : > { %v716_v53 = vpop.f32.mrf.mxu0  ;;  %v1802_v55 = vadd.f32 %v843_v52, %v754_v51 }
  0xb2   : > { %v805_v54 = vpop.f32.mrf.mxu1 }
  0xb3   : > { %v806_v56 = vadd.f32 %v805_v54, %v716_v53  ;;  %998 = vst [vmem:[%s1799_s11 + $0x80] sm:$0xff] %v1802_v55 }
  0xb5   : > { %983 = vst [vmem:[%s1799_s11 + $0x8] sm:$0xff] %v806_v56  ;;  %v1014_v58 = vadd.f32 %v806_v56, %v804_v50  ;;  %v1052_v59 = vmul.f32 %v806_v56, %v806_v56 }
  0xb7   : > { %v1083_v60 = vadd.f32 %v1052_v59, %v1051_v57  ;;  %v756_v61 = vpop.f32.mrf.mxu2 }
  0xb8   : > { %v845_v62 = vpop.f32.mrf.mxu3 }
  0xb9   : > { %v719_v63 = vpop.f32.mrf.mxu0  ;;  %v1807_v1 = vadd.f32 %v845_v62, %v756_v61 }
  0xba   : > { %v808_v0 = vpop.f32.mrf.mxu1 }
  0xbb   : > { %v809_v2 = vadd.f32 %v808_v0, %v719_v63  ;;  %999 = vst [vmem:[%s1799_s11 + $0x88] sm:$0xff] %v1807_v1 }
  0xbd   : > { %984 = vst [vmem:[%s1799_s11 + $0x10] sm:$0xff] %v809_v2  ;;  %v1015_v3 = vadd.f32 %v1014_v58, %v809_v2  ;;  %v1053_v4 = vmul.f32 %v809_v2, %v809_v2 }
  0xbf   : > { %v1084_v5 = vadd.f32 %v1083_v60, %v1053_v4  ;;  %v759_v6 = vpop.f32.mrf.mxu2 }
  0xc0   : > { %v848_v7 = vpop.f32.mrf.mxu3 }
  0xc1   : > { %v721_v8 = vpop.f32.mrf.mxu0  ;;  %v1812_v10 = vadd.f32 %v848_v7, %v759_v6 }
  0xc2   : > { %v810_v9 = vpop.f32.mrf.mxu1 }
  0xc3   : > { %v811_v11 = vadd.f32 %v810_v9, %v721_v8  ;;  %1000 = vst [vmem:[%s1799_s11 + $0x90] sm:$0xff] %v1812_v10 }
  0xc5   : > { %985 = vst [vmem:[%s1799_s11 + $0x18] sm:$0xff] %v811_v11  ;;  %v1016_v12 = vadd.f32 %v1015_v3, %v811_v11  ;;  %v1054_v13 = vmul.f32 %v811_v11, %v811_v11 }
  0xc7   : > { %v1085_v14 = vadd.f32 %v1084_v5, %v1054_v13  ;;  %v761_v15 = vpop.f32.mrf.mxu2 }
  0xc8   : > { %v850_v16 = vpop.f32.mrf.mxu3 }
  0xc9   : > { %v724_v17 = vpop.f32.mrf.mxu0  ;;  %v1817_v19 = vadd.f32 %v850_v16, %v761_v15 }
  0xca   : > { %v813_v18 = vpop.f32.mrf.mxu1 }
  0xcb   : > { %v814_v20 = vadd.f32 %v813_v18, %v724_v17  ;;  %1001 = vst [vmem:[%s1799_s11 + $0x98] sm:$0xff] %v1817_v19 }
  0xcd   : > { %986 = vst [vmem:[%s1799_s11 + $0x20] sm:$0xff] %v814_v20  ;;  %v1822_v21 = vadd.f32 %v1016_v12, %v814_v20  ;;  %v1055_v22 = vmul.f32 %v814_v20, %v814_v20 }
  0xcf   : > { %v1824_v23 = vadd.f32 %v1085_v14, %v1055_v22  ;;  %v764_v24 = vpop.f32.mrf.mxu2 }
  0xd0   : > { %v853_v25 = vpop.f32.mrf.mxu3 }
  0xd1   : > { %v726_v26 = vpop.f32.mrf.mxu0  ;;  %v1826_v28 = vadd.f32 %v853_v25, %v764_v24 }
  0xd2   : > { %v815_v27 = vpop.f32.mrf.mxu1 }
  0xd3   : > { %v816_v29 = vadd.f32 %v815_v27, %v726_v26  ;;  %1002 = vst [vmem:[%s1799_s11 + $0xa0] sm:$0xff] %v1826_v28 }
  0xd5   : > { %987 = vst [vmem:[%s1799_s11 + $0x28] sm:$0xff] %v816_v29  ;;  %v1056_v11 = vmul.f32 %v816_v29, %v816_v29  ;;  %v1018_v12 = vadd.f32 %v1822_v21, %v816_v29 }
  0xd7   : > { %v766_v30 = vpop.f32.mrf.mxu2  ;;  %v1087_v20 = vadd.f32 %v1824_v23, %v1056_v11 }
  0xd8   : > { %v855_v31 = vpop.f32.mrf.mxu3 }
  0xd9   : > { %v729_v32 = vpop.f32.mrf.mxu0  ;;  %v1831_v34 = vadd.f32 %v855_v31, %v766_v30 }
  0xda   : > { %v818_v33 = vpop.f32.mrf.mxu1 }
  0xdb   : > { %v819_v35 = vadd.f32 %v818_v33, %v729_v32  ;;  %1003 = vst [vmem:[%s1799_s11 + $0xa8] sm:$0xff] %v1831_v34 }
  0xdd   : > { %988 = vst [vmem:[%s1799_s11 + $0x30] sm:$0xff] %v819_v35  ;;  %v1057_v13 = vmul.f32 %v819_v35, %v819_v35  ;;  %v1019_v22 = vadd.f32 %v1018_v12, %v819_v35  ;;  %v1068_v12 = vmul.f32 %v1807_v1, %v1807_v1 }
  0xdf   : > { %v769_v36 = vpop.f32.mrf.mxu2  ;;  %v1088_v26 = vadd.f32 %v1087_v20, %v1057_v13  ;;  %v1069_v20 = vmul.f32 %v1812_v10, %v1812_v10 }
  0xe0   : > { %v858_v37 = vpop.f32.mrf.mxu3 }
  0xe1   : > { %v731_v38 = vpop.f32.mrf.mxu0  ;;  %v1836_v40 = vadd.f32 %v858_v37, %v769_v36 }
  0xe2   : > { %v820_v39 = vpop.f32.mrf.mxu1 }
  0xe3   : > { %v821_v41 = vadd.f32 %v820_v39, %v731_v38  ;;  %1004 = vst [vmem:[%s1799_s11 + $0xb0] sm:$0xff] %v1836_v40 }
  0xe5   : > { %989 = vst [vmem:[%s1799_s11 + $0x38] sm:$0xff] %v821_v41  ;;  %v1058_v24 = vmul.f32 %v821_v41, %v821_v41  ;;  %v1020_v27 = vadd.f32 %v1019_v22, %v821_v41 }
  0xe7   : > { %v771_v42 = vpop.f32.mrf.mxu2  ;;  %v1089_v21 = vadd.f32 %v1088_v26, %v1058_v24 }
  0xe8   : > { %v860_v43 = vpop.f32.mrf.mxu3 }
  0xe9   : > { %v734_v44 = vpop.f32.mrf.mxu0  ;;  %v1841_v46 = vadd.f32 %v860_v43, %v771_v42 }
  0xea   : > { %v823_v45 = vpop.f32.mrf.mxu1 }
  0xeb   : > { %v824_v47 = vadd.f32 %v823_v45, %v734_v44  ;;  %1005 = vst [vmem:[%s1799_s11 + $0xb8] sm:$0xff] %v1841_v46 }
  0xed   : > { %990 = vst [vmem:[%s1799_s11 + $0x40] sm:$0xff] %v824_v47  ;;  %v1059_v30 = vmul.f32 %v824_v47, %v824_v47  ;;  %v1021_v29 = vadd.f32 %v1020_v27, %v824_v47 }
  0xef   : > { %v774_v48 = vpop.f32.mrf.mxu2  ;;  %v1090_v32 = vadd.f32 %v1089_v21, %v1059_v30  ;;  %v1072_v21 = vmul.f32 %v1831_v34, %v1831_v34 }
  0xf0   : > { %v863_v49 = vpop.f32.mrf.mxu3 }
  0xf1   : > { %v736_v50 = vpop.f32.mrf.mxu0  ;;  %v1846_v52 = vadd.f32 %v863_v49, %v774_v48 }
  0xf2   : > { %v825_v51 = vpop.f32.mrf.mxu1 }
  0xf3   : > { %v826_v53 = vadd.f32 %v825_v51, %v736_v50  ;;  %1006 = vst [vmem:[%s1799_s11 + $0xc0] sm:$0xff] %v1846_v52 }
  0xf5   : > { %991 = vst [vmem:[%s1799_s11 + $0x48] sm:$0xff] %v826_v53  ;;  %v1060_v31 = vmul.f32 %v826_v53, %v826_v53  ;;  %v1022_v33 = vadd.f32 %v1021_v29, %v826_v53 }
  0xf7   : > { %v776_v54 = vpop.f32.mrf.mxu2  ;;  %v1091_v42 = vadd.f32 %v1090_v32, %v1060_v31  ;;  %v1073_v31 = vmul.f32 %v1836_v40, %v1836_v40 }
  0xf8   : > { %v865_v56 = vpop.f32.mrf.mxu3 }
  0xf9   : > { %v739_v57 = vpop.f32.mrf.mxu0  ;;  %v1851_v59 = vadd.f32 %v865_v56, %v776_v54 }
  0xfa   : > { %v828_v58 = vpop.f32.mrf.mxu1 }
  0xfb   : > { %v829_v60 = vadd.f32 %v828_v58, %v739_v57  ;;  %1007 = vst [vmem:[%s1799_s11 + $0xc8] sm:$0xff] %v1851_v59 }
  0xfd   : > { %992 = vst [vmem:[%s1799_s11 + $0x50] sm:$0xff] %v829_v60  ;;  %v1061_v36 = vmul.f32 %v829_v60, %v829_v60  ;;  %v1023_v43 = vadd.f32 %v1022_v33, %v829_v60 }
  0xff   : > { %v779_v61 = vpop.f32.mrf.mxu2  ;;  %v1092_v45 = vadd.f32 %v1091_v42, %v1061_v36 }
 0x100   : > { %v868_v62 = vpop.f32.mrf.mxu3 }
 0x101   : > { %v741_v63 = vpop.f32.mrf.mxu0  ;;  %v1856_v2 = vadd.f32 %v868_v62, %v779_v61 }
 0x102   : > { %v830_v0 = vpop.f32.mrf.mxu1 }
 0x103   : > { %v831_v3 = vadd.f32 %v830_v0, %v741_v63  ;;  %1008 = vst [vmem:[%s1799_s11 + $0xd0] sm:$0xff] %v1856_v2 }
 0x105   : > { %993 = vst [vmem:[%s1799_s11 + $0x58] sm:$0xff] %v831_v3  ;;  %v1062_v44 = vmul.f32 %v831_v3, %v831_v3  ;;  %v1024_v48 = vadd.f32 %v1023_v43, %v831_v3 }
 0x107   : > { %v781_v4 = vpop.f32.mrf.mxu2  ;;  %v1093_v49 = vadd.f32 %v1092_v45, %v1062_v44 }
 0x108   : > { %v870_v5 = vpop.f32.mrf.mxu3 }
 0x109   : > { %v744_v6 = vpop.f32.mrf.mxu0  ;;  %v1861_v8 = vadd.f32 %v870_v5, %v781_v4 }
 0x10a   : > { %v833_v7 = vpop.f32.mrf.mxu1 }
 0x10b   : > { %v834_v9 = vadd.f32 %v833_v7, %v744_v6  ;;  %1009 = vst [vmem:[%s1799_s11 + $0xd8] sm:$0xff] %v1861_v8  ;;  %v1067_v7 = vmul.f32 %v1802_v55, %v1802_v55  ;;  %v1078_v44 = vmul.f32 %v1861_v8, %v1861_v8 }
 0x10d   : > { %994 = vst [vmem:[%s1799_s11 + $0x60] sm:$0xff] %v834_v9  ;;  %v1063_v47 = vmul.f32 %v834_v9, %v834_v9  ;;  %v1025_v50 = vadd.f32 %v1024_v48, %v834_v9 }
 0x10f   : > { %v784_v14 = vpop.f32.mrf.mxu2  ;;  %v1094_v53 = vadd.f32 %v1093_v49, %v1063_v47 }
 0x110   : > { %v873_v15 = vpop.f32.mrf.mxu3 }
 0x111   : > { %v746_v16 = vpop.f32.mrf.mxu0  ;;  %v1867_v18 = vadd.f32 %v873_v15, %v784_v14 }
 0x112   : > { %v835_v17 = vpop.f32.mrf.mxu1 }
 0x113   : > { %v836_v25 = vadd.f32 %v835_v17, %v746_v16  ;;  %1010 = vst [vmem:[%s1799_s11 + $0xe0] sm:$0xff] %v1867_v18 }
 0x115   : > { %995 = vst [vmem:[%s1799_s11 + $0x68] sm:$0xff] %v836_v25  ;;  %v1064_v51 = vmul.f32 %v836_v25, %v836_v25  ;;  %v1026_v54 = vadd.f32 %v1025_v50, %v836_v25 }
 0x117   : > { %v786_v37 = vpop.f32.mrf.mxu2  ;;  %v1095_v63 = vadd.f32 %v1094_v53, %v1064_v51 }
 0x118   : > { %v875_v38 = vpop.f32.mrf.mxu3 }
 0x119   : > { %v749_v23 = vpop.f32.mrf.mxu0  ;;  %v1873_v39 = vadd.f32 %v875_v38, %v786_v37 }
 0x11a   : > { %v838_v35 = vpop.f32.mrf.mxu1 }
 0x11b   : > { %v839_v41 = vadd.f32 %v838_v35, %v749_v23  ;;  %1011 = vst [vmem:[%s1799_s11 + $0xe8] sm:$0xff] %v1873_v39 }
 0x11d   : > { %996 = vst [vmem:[%s1799_s11 + $0x70] sm:$0xff] %v839_v41  ;;  %v1065_v56 = vmul.f32 %v839_v41, %v839_v41  ;;  %v1027_v0 = vadd.f32 %v1026_v54, %v839_v41 }
 0x11f   : > { %v789_v57 = vpop.f32.mrf.mxu2  ;;  %v1096_v3 = vadd.f32 %v1095_v63, %v1065_v56 }
 0x120   : > { %v878_v58 = vpop.f32.mrf.mxu3 }
 0x121   : > { %v751_v61 = vpop.f32.mrf.mxu0  ;;  %v879_v62 = vadd.f32 %v878_v58, %v789_v57 }
 0x122   : > { %v840_v60 = vpop.f32.mrf.mxu1 }
 0x123   : > { %v841_v4 = vadd.f32 %v840_v60, %v751_v61  ;;  %1012 = vst [vmem:[%s1799_s11 + $0xf0] sm:$0xff] %v879_v62  ;;  %v1081_v53 = vmul.f32 %v879_v62, %v879_v62 }
 0x125   : > { %997 = vst [vmem:[%s1799_s11 + $0x78] sm:$0xff] %v841_v4  ;;  %v1028_v5 = vadd.f32 %v1027_v0, %v841_v4  ;;  %v1066_v6 = vmul.f32 %v841_v4, %v841_v4 }
 0x127   : > { %v1029_v9 = vadd.f32 %v1028_v5, %v1802_v55  ;;  %v1097_v11 = vadd.f32 %v1096_v3, %v1066_v6  ;;  %v791_v15 = vpop.f32.mrf.mxu2  ;;  %v1070_v55 = vmul.f32 %v1817_v19, %v1817_v19 }
 0x128   : > { %v880_v16 = vpop.f32.mrf.mxu3 }
 0x129   : > { %v1030_v13 = vadd.f32 %v1029_v9, %v1807_v1  ;;  %v1098_v14 = vadd.f32 %v1097_v11, %v1067_v7  ;;  %v881_v17 = vadd.f32 %v880_v16, %v791_v15  ;;  %v1071_v1 = vmul.f32 %v1826_v28, %v1826_v28 }
 0x12b   : > { %v1031_v22 = vadd.f32 %v1030_v13, %v1812_v10  ;;  %v1099_v24 = vadd.f32 %v1098_v14, %v1068_v12  ;;  %1013 = vst [vmem:[%s1799_s11 + $0xf8] sm:$0xff] %v881_v17  ;;  %v1082_v56 = vmul.f32 %v881_v17, %v881_v17 }
 0x12d   : > { %v1032_v25 = vadd.f32 %v1031_v22, %v1817_v19  ;;  %v1100_v26 = vadd.f32 %v1099_v24, %v1069_v20  ;;  %v1074_v19 = vmul.f32 %v1841_v46, %v1841_v46 }
 0x12f   : > { %v1033_v27 = vadd.f32 %v1032_v25, %v1826_v28  ;;  %v1101_v30 = vadd.f32 %v1100_v26, %v1070_v55  ;;  %v1075_v28 = vmul.f32 %v1846_v52, %v1846_v52 }
 0x131   : > { %v1034_v29 = vadd.f32 %v1033_v27, %v1831_v34  ;;  %v1102_v10 = vadd.f32 %v1101_v30, %v1071_v1  ;;  %v1076_v34 = vmul.f32 %v1851_v59, %v1851_v59 }
 0x133   : > { %v1103_v32 = vadd.f32 %v1102_v10, %v1072_v21  ;;  %v1035_v33 = vadd.f32 %v1034_v29, %v1836_v40  ;;  %v1077_v40 = vmul.f32 %v1856_v2, %v1856_v2 }
 0x135   : > { %v1036_v36 = vadd.f32 %v1035_v33, %v1841_v46  ;;  %v1104_v37 = vadd.f32 %v1103_v32, %v1073_v31 }
 0x137   : > { %v1037_v38 = vadd.f32 %v1036_v36, %v1846_v52  ;;  %v1105_v23 = vadd.f32 %v1104_v37, %v1074_v19 }
 0x139   : > { %v1038_v35 = vadd.f32 %v1037_v38, %v1851_v59  ;;  %v1106_v42 = vadd.f32 %v1105_v23, %v1075_v28  ;;  %v1079_v59 = vmul.f32 %v1867_v18, %v1867_v18 }
 0x13b   : > { %v1039_v43 = vadd.f32 %v1038_v35, %v1856_v2  ;;  %v1107_v46 = vadd.f32 %v1106_v42, %v1076_v34  ;;  %v1080_v2 = vmul.f32 %v1873_v39, %v1873_v39 }
 0x13d   : > { %v1040_v41 = vadd.f32 %v1039_v43, %v1861_v8  ;;  %v1108_v52 = vadd.f32 %v1107_v46, %v1077_v40 }
 0x13f   : > { %v1041_v45 = vadd.f32 %v1040_v41, %v1867_v18  ;;  %v1109_v48 = vadd.f32 %v1108_v52, %v1078_v44 }
 0x141   : > { %v1110_v47 = vadd.f32 %v1109_v48, %v1079_v59  ;;  %v1042_v49 = vadd.f32 %v1041_v45, %v1873_v39 }
 0x143   : > { %v1111_v50 = vadd.f32 %v1110_v47, %v1080_v2  ;;  %v1043_v51 = vadd.f32 %v1042_v49, %v879_v62 }
 0x145   : > { %v1112_v54 = vadd.f32 %v1111_v50, %v1081_v53  ;;  %v1044_v8 = vadd.f32 %v1043_v51, %v881_v17 }
 0x147   : > { %v1045_v57 = vrot.slane %v1044_v8, 4  ;;  %v1113_v58 = vadd.f32 %v1112_v54, %v1082_v56 }
 0x149   : > { %v1046_v61 = vadd.f32 %v1045_v57, %v1044_v8  ;;  %v1114_v60 = vrot.slane %v1113_v58, 4 }
 0x14b   : > { %v1047_v18 = vrot.slane %v1046_v61, 2  ;;  %v1115_v63 = vadd.f32 %v1114_v60, %v1113_v58 }
 0x14d   : > { %v1048_v0 = vadd.f32 %v1047_v18, %v1046_v61  ;;  %v1116_v4 = vrot.slane %v1115_v63, 2 }
 0x14f   : > { %v1049_v3 = vrot.slane %v1048_v0, 1  ;;  %v1117_v5 = vadd.f32 %v1116_v4, %v1115_v63 }
 0x151   : > { %v1050_v39 = vadd.f32 %v1049_v3, %v1048_v0  ;;  %v1118_v62 = vrot.slane %v1117_v5, 1 }
 0x153   : > { %v1119_v6 = vadd.f32 %v1118_v62, %v1117_v5  ;;  %1120 = vst [vmem:[%s309_s14] sm:$0xff] %v1050_v39 }
 0x155   : > { %1121 = vst [vmem:[%s316_s21] sm:$0xff] %v1119_v6 }
 0x156 PF: > { %s15_s17 = sadd.s32 1, %s1624_s17   ;;  %s1945_s15 = smov %s1620_s16 }
 0x157   : > { %p12_p6 = scmp.ge.s32.totalorder %s15_s17, 4   ;;  %s1946_s16 = smov %s1948_s18 }
 0x159   :  { %14 = sbr.rel (!%p12_p6) target bundleno = 2 (0x2), region = 93 }

</bundles_post_ra>
